<compile_context>
chip_gen: v7x
topology: tpu7x:2x2x1
jax: 0.10.0
libtpu: 0.0.40
codegen_flags: <defaults>
</compile_context>

<pallas_src>
import functools

import jax
import jax.numpy as jnp
from jax.experimental import pallas as pl
from jax.experimental.pallas import tpu as pltpu

IN_FEATURES = 28 * 28          # 784
HIDDEN = 32
NUM_CLASSES = 10
PADDED_CLASSES = 128           # lane-dense output width
_MASK_VAL = -1.0e30            # effectively -inf, avoids inf arithmetic


def _round_up(x, m):
    return ((x + m - 1) // m) * m


def mlp_kernel(x_ref, w1_ref, b1_ref, w2_ref, b2_ref, o_ref):
    # x_ref: (TILE_N, 784) bf16, w1: (784, 32) bf16, b1: (1, 32) f32,
    # w2: (32, 128) f32 (cols >= 10 are zero-padded), b2: (1, 128) f32,
    # o_ref: (TILE_N, 128) f32
    x = x_ref[...]

    # linear1 + relu (bf16 inputs, f32 accumulation on the MXU)
    h = jnp.dot(x, w1_ref[...], preferred_element_type=jnp.float32) + b1_ref[...]
    h = jnp.maximum(h, 0.0)

    # linear2 (lane-padded to 128 columns)
    logits = jnp.dot(h, w2_ref[...], preferred_element_type=jnp.float32) + b2_ref[...]

    # mask the padded lanes so they do not corrupt max / logsumexp
    lane = jax.lax.broadcasted_iota(jnp.int32, logits.shape, 1)
    logits = jnp.where(lane < NUM_CLASSES, logits, _MASK_VAL)

    # numerically stable log_softmax over the last dim
    m = jnp.max(logits, axis=-1, keepdims=True)
    shifted = logits - m
    lse = jnp.log(jnp.sum(jnp.exp(shifted), axis=-1, keepdims=True))
    o_ref[...] = shifted - lse


@functools.partial(jax.jit, static_argnames=("tile_n",))
def mlp_forward(x, w1, b1, w2, b2, tile_n=1024):
    n = x.shape[0]

    # Flatten like PyTorch .view(-1, 784); cast to bf16 to halve HBM read traffic.
    x2d = x.reshape(n, IN_FEATURES).astype(jnp.bfloat16)
    w1b = w1.astype(jnp.bfloat16)
    b1_2d = b1.reshape(1, HIDDEN).astype(jnp.float32)

    # Lane-dense second layer: zero-pad output columns 10..127.
    w2p = jnp.zeros((HIDDEN, PADDED_CLASSES), jnp.float32).at[:, :NUM_CLASSES].set(
        w2.astype(jnp.float32))
    b2p = jnp.zeros((1, PADDED_CLASSES), jnp.float32).at[:, :NUM_CLASSES].set(
        b2.reshape(1, NUM_CLASSES).astype(jnp.float32))

    # Pick the batch tile: large to amortize per-step overhead, but never
    # larger than the (8-rounded) batch itself; pad N up to a tile multiple.
    tile = min(tile_n, _round_up(n, 8))
    n_pad = _round_up(n, tile)
    if n_pad != n:
        x2d = jnp.pad(x2d, ((0, n_pad - n), (0, 0)))
    grid = (n_pad // tile,)

    weight_bytes = (IN_FEATURES * HIDDEN * 2 + HIDDEN * 4
                    + HIDDEN * PADDED_CLASSES * 4 + PADDED_CLASSES * 4)
    cost = pl.CostEstimate(
        flops=2 * n_pad * (IN_FEATURES * HIDDEN + HIDDEN * PADDED_CLASSES),
        transcendentals=n_pad * PADDED_CLASSES,
        bytes_accessed=n_pad * (IN_FEATURES * 2 + PADDED_CLASSES * 4) + weight_bytes,
    )

    out = pl.pallas_call(
        mlp_kernel,
        out_shape=jax.ShapeDtypeStruct((n_pad, PADDED_CLASSES), jnp.float32),
        grid_spec=pltpu.PrefetchScalarGridSpec(
            num_scalar_prefetch=0,
            grid=grid,
            in_specs=[
                pl.BlockSpec((tile, IN_FEATURES), lambda i: (i, 0)),
                pl.BlockSpec((IN_FEATURES, HIDDEN), lambda i: (0, 0)),
                pl.BlockSpec((1, HIDDEN), lambda i: (0, 0)),
                pl.BlockSpec((HIDDEN, PADDED_CLASSES), lambda i: (0, 0)),
                pl.BlockSpec((1, PADDED_CLASSES), lambda i: (0, 0)),
            ],
            out_specs=pl.BlockSpec((tile, PADDED_CLASSES), lambda i: (i, 0)),
        ),
        compiler_params=pltpu.CompilerParams(
            dimension_semantics=("parallel",),
        ),
        cost_estimate=cost,
    )(x2d, w1b, b1_2d, w2p, b2p)

    return out[:n, :NUM_CLASSES]


def init_params():
    # nn.Linear-shaped params stored transposed as (in, out) so the kernel
    # computes x @ W + b directly.
    k = jax.random.PRNGKey(0)
    k1, k2, k3, k4 = jax.random.split(k, 4)
    lim1 = 1.0 / jnp.sqrt(float(IN_FEATURES))
    lim2 = 1.0 / jnp.sqrt(float(HIDDEN))
    w1 = jax.random.uniform(k1, (IN_FEATURES, HIDDEN), jnp.float32, -lim1, lim1)
    b1 = jax.random.uniform(k2, (HIDDEN,), jnp.float32, -lim1, lim1)
    w2 = jax.random.uniform(k3, (HIDDEN, NUM_CLASSES), jnp.float32, -lim2, lim2)
    b2 = jax.random.uniform(k4, (NUM_CLASSES,), jnp.float32, -lim2, lim2)
    return w1, b1, w2, b2


def reference_forward(x, w1, b1, w2, b2):
    # Matches the kernel's input precision: bf16-cast x/w1, f32 accumulation.
    n = x.shape[0]
    x2d = x.reshape(n, IN_FEATURES).astype(jnp.bfloat16).astype(jnp.float32)
    w1f = w1.astype(jnp.bfloat16).astype(jnp.float32)
    h = jnp.maximum(
        jnp.dot(x2d, w1f, precision=jax.lax.Precision.HIGHEST) + b1, 0.0)
    logits = jnp.dot(h, w2, precision=jax.lax.Precision.HIGHEST) + b2
    return jax.nn.log_softmax(logits, axis=-1)


if __name__ == "__main__":
    key = jax.random.PRNGKey(0)
    x = jax.random.normal(key, (8, 1, 28, 28), jnp.float32)  # NCHW MNIST-like input
    w1, b1, w2, b2 = init_params()

    out = mlp_forward(x, w1, b1, w2, b2)
    out = jax.block_until_ready(out)

    ref = reference_forward(x, w1, b1, w2, b2)
    assert out.shape == (8, NUM_CLASSES)
    assert jnp.allclose(out, ref, atol=1e-2, rtol=1e-2), "mismatch vs reference"

    print("KERNEL_OK")
</pallas_src>

<mosaic_0001>
module attributes {stable_mosaic.version = 11 : i64} {
  func.func @mlp_kernel(%arg0: i32, %arg1: memref<8x784xbf16, #tpu.memory_space<vmem>>, %arg2: memref<784x32xbf16, #tpu.memory_space<vmem>>, %arg3: memref<1x32xf32, #tpu.memory_space<vmem>>, %arg4: memref<32x128xf32, #tpu.memory_space<vmem>>, %arg5: memref<1x128xf32, #tpu.memory_space<vmem>>, %arg6: memref<8x128xf32, #tpu.memory_space<vmem>>) attributes {dimension_semantics = [#tpu.dimension_semantics<parallel>], iteration_bounds = array<i64: 1>, scalar_prefetch = 0 : i64, scratch_operands = 0 : i64, tpu.core_type = #tpu.core_type<tc>, window_params = [{transform_indices = @transform_0, window_bounds = array<i64: 8, 784>}, {pipeline_mode = #tpu.pipeline_mode<synchronous>, transform_indices = @transform_1, window_bounds = array<i64: 784, 32>}, {pipeline_mode = #tpu.pipeline_mode<synchronous>, transform_indices = @transform_2, window_bounds = array<i64: 1, 32>}, {pipeline_mode = #tpu.pipeline_mode<synchronous>, transform_indices = @transform_3, window_bounds = array<i64: 32, 128>}, {pipeline_mode = #tpu.pipeline_mode<synchronous>, transform_indices = @transform_4, window_bounds = array<i64: 1, 128>}, {transform_indices = @transform_5, window_bounds = array<i64: 8, 128>}]} {
    %c0 = arith.constant 0 : index
    %c0_0 = arith.constant 0 : index
    %0 = vector.load %arg1[%c0, %c0_0] : memref<8x784xbf16, #tpu.memory_space<vmem>>, vector<8x784xbf16>
    %c0_1 = arith.constant 0 : index
    %c0_2 = arith.constant 0 : index
    %1 = vector.load %arg2[%c0_1, %c0_2] : memref<784x32xbf16, #tpu.memory_space<vmem>>, vector<784x32xbf16>
    %cst = arith.constant dense<0.000000e+00> : vector<8x32xf32>
    %2 = tpu.matmul %0, %1, %cst {dimension_numbers = #tpu.dot_dimension_numbers<[1], [0], [0], [1], [0, 0, 1, 1], [], []>} : vector<8x784xbf16>, vector<784x32xbf16>, vector<8x32xf32> -> vector<8x32xf32>
    %c0_3 = arith.constant 0 : index
    %c0_4 = arith.constant 0 : index
    %3 = vector.load %arg3[%c0_3, %c0_4] : memref<1x32xf32, #tpu.memory_space<vmem>>, vector<1x32xf32>
    %4 = vector.broadcast %3 : vector<1x32xf32> to vector<8x32xf32>
    %5 = arith.addf %2, %4 : vector<8x32xf32>
    %cst_5 = arith.constant 0.000000e+00 : f32
    %6 = vector.broadcast %cst_5 : f32 to vector<8x32xf32>
    %7 = arith.maximumf %5, %6 : vector<8x32xf32>
    %c0_6 = arith.constant 0 : index
    %c0_7 = arith.constant 0 : index
    %8 = vector.load %arg4[%c0_6, %c0_7] : memref<32x128xf32, #tpu.memory_space<vmem>>, vector<32x128xf32>
    %cst_8 = arith.constant dense<0.000000e+00> : vector<8x128xf32>
    %9 = tpu.matmul %7, %8, %cst_8 {dimension_numbers = #tpu.dot_dimension_numbers<[1], [0], [0], [1], [0, 0, 1, 1], [], []>} : vector<8x32xf32>, vector<32x128xf32>, vector<8x128xf32> -> vector<8x128xf32>
    %c0_9 = arith.constant 0 : index
    %c0_10 = arith.constant 0 : index
    %10 = vector.load %arg5[%c0_9, %c0_10] : memref<1x128xf32, #tpu.memory_space<vmem>>, vector<1x128xf32>
    %11 = vector.broadcast %10 : vector<1x128xf32> to vector<8x128xf32>
    %12 = arith.addf %9, %11 : vector<8x128xf32>
    %13 = tpu.iota {dimensions = array<i32: 1>} : vector<8x128xi32>
    %c10_i32 = arith.constant 10 : i32
    %14 = vector.broadcast %c10_i32 : i32 to vector<8x128xi32>
    %15 = arith.cmpi slt, %13, %14 : vector<8x128xi32>
    %cst_11 = arith.constant -1.000000e+30 : f32
    %16 = vector.broadcast %cst_11 : f32 to vector<8x128xf32>
    %17 = arith.select %15, %12, %16 : vector<8x128xi1>, vector<8x128xf32>
    %cst_12 = arith.constant dense<0xFF800000> : vector<8xf32>
    %18 = vector.multi_reduction <maximumf>, %17, %cst_12 [1] : vector<8x128xf32> to vector<8xf32>
    %19 = vector.shape_cast %18 : vector<8xf32> to vector<8x1xf32>
    %20 = vector.broadcast %19 : vector<8x1xf32> to vector<8x128xf32>
    %21 = arith.subf %17, %20 : vector<8x128xf32>
    %22 = math.exp %21 : vector<8x128xf32>
    %cst_13 = arith.constant dense<0.000000e+00> : vector<8xf32>
    %23 = vector.multi_reduction <add>, %22, %cst_13 [1] : vector<8x128xf32> to vector<8xf32>
    %24 = vector.shape_cast %23 : vector<8xf32> to vector<8x1xf32>
    %25 = math.log %24 : vector<8x1xf32>
    %26 = vector.broadcast %25 : vector<8x1xf32> to vector<8x128xf32>
    %27 = arith.subf %21, %26 : vector<8x128xf32>
    %c0_14 = arith.constant 0 : index
    %c0_15 = arith.constant 0 : index
    %28 = vector.load %arg6[%c0_14, %c0_15] : memref<8x128xf32, #tpu.memory_space<vmem>>, vector<8x128xf32>
    tpu.vector_store %arg6[%c0_14, %c0_15], %27 {strides = array<i32>} : memref<8x128xf32, #tpu.memory_space<vmem>>, vector<8x128xf32>,
    return
  }
  func.func @transform_0(%arg0: i32) -> (i32, i32) {
    %c0_i32 = arith.constant 0 : i32
    %c0_i32_0 = arith.constant 0 : i32
    return %arg0, %c0_i32 : i32, i32
  }
  func.func @transform_1(%arg0: i32) -> (i32, i32) {
    %c0_i32 = arith.constant 0 : i32
    %c0_i32_0 = arith.constant 0 : i32
    %c0_i32_1 = arith.constant 0 : i32
    return %c0_i32, %c0_i32_0 : i32, i32
  }
  func.func @transform_2(%arg0: i32) -> (i32, i32) {
    %c0_i32 = arith.constant 0 : i32
    %c0_i32_0 = arith.constant 0 : i32
    %c0_i32_1 = arith.constant 0 : i32
    return %c0_i32, %c0_i32_0 : i32, i32
  }
  func.func @transform_3(%arg0: i32) -> (i32, i32) {
    %c0_i32 = arith.constant 0 : i32
    %c0_i32_0 = arith.constant 0 : i32
    %c0_i32_1 = arith.constant 0 : i32
    return %c0_i32, %c0_i32_0 : i32, i32
  }
  func.func @transform_4(%arg0: i32) -> (i32, i32) {
    %c0_i32 = arith.constant 0 : i32
    %c0_i32_0 = arith.constant 0 : i32
    %c0_i32_1 = arith.constant 0 : i32
    return %c0_i32, %c0_i32_0 : i32, i32
  }
  func.func @transform_5(%arg0: i32) -> (i32, i32) {
    %c0_i32 = arith.constant 0 : i32
    %c0_i32_0 = arith.constant 0 : i32
    return %arg0, %c0_i32 : i32, i32
  }
}

</mosaic_0001>

<bundles_post_ra>
// kernel: mlp_forward.1
= control target key start
LH: loop header
LB: loop body
LE: loop exit
PB: predicated region body
PF: predicated region fallthrough
CT: control target
= control target key end

     0   :  { %v972_v43 = vmov 0.0   ;;  %vm973_vm0 = vmmov 0   ;;  %s1197_s0 = inlined_call_operand.vmem [shape: bf16[8,784], index: 0, kind: input, shape index: {}]   ;;  %s1198_s1 = inlined_call_operand.vmem [shape: bf16[784,32], index: 1, kind: input, shape index: {}]   ;;  %s1199_s2 = inlined_call_operand.vmem [shape: f32[1,32], index: 2, kind: input, shape index: {}]   ;;  %s1200_s3 = inlined_call_operand.vmem [shape: f32[32,128], index: 3, kind: input, shape index: {}]   ;;  %s1201_s4 = inlined_call_operand.vmem [shape: f32[1,128], index: 4, kind: input, shape index: {}]   ;;  %s1202_s5 = inlined_call_operand.hbm [shape: f32[8,128], index: 5, kind: output, shape index: {}]  }
   0x1   :  { %v888_v0 = vld [vmem:[%s1198_s1 + $0x40] sm:$0xff]   ;;  %v892_v4 = vld [vmem:[%s1198_s1 + $0x48] sm:$0xff]   ;;  %v896_v8 = vld [vmem:[%s1198_s1 + $0x50] sm:$0xff]  }
   0x2   :  { %v889_v1 = vld [vmem:[%s1198_s1] sm:$0xff]   ;;  %788 = vmatprep.subr.bf16.mxu0 %v888_v0  ;;  %v893_v5 = vld [vmem:[%s1198_s1 + $0x8] sm:$0xff]   ;;  %v897_v9 = vld [vmem:[%s1198_s1 + $0x10] sm:$0xff]  }
   0x3   :  { %v890_v2 = vld [vmem:[%s1198_s1 + $0xc0] sm:$0xff]   ;;  %789 = vmatpush3.bf16.msra.mxu0 %v889_v1  ;;  %v894_v6 = vld [vmem:[%s1198_s1 + $0xc8] sm:$0xff]   ;;  %v898_v10 = vld [vmem:[%s1198_s1 + $0xd0] sm:$0xff]  }
   0x4   :  { %v891_v3 = vld [vmem:[%s1198_s1 + $0x80] sm:$0xff]   ;;  %810 = vmatprep.subr.bf16.mxu1 %v890_v2  ;;  %790 = vmatprep.subr.bf16.mxu0 %v892_v4  ;;  %v895_v7 = vld [vmem:[%s1198_s1 + $0x88] sm:$0xff]   ;;  %v899_v11 = vld [vmem:[%s1198_s1 + $0x90] sm:$0xff]  }
   0x5   :  { %811 = vmatpush3.bf16.msra.mxu1 %v891_v3  ;;  %v900_v12 = vld [vmem:[%s1198_s1 + $0x58] sm:$0xff]   ;;  %v904_v16 = vld [vmem:[%s1198_s1 + $0x60] sm:$0xff]   ;;  %v908_v20 = vld [vmem:[%s1198_s1 + $0x68] sm:$0xff]  }
   0x6   :  { %812 = vmatprep.subr.bf16.mxu1 %v894_v6  ;;  %v901_v13 = vld [vmem:[%s1198_s1 + $0x18] sm:$0xff]   ;;  %v905_v17 = vld [vmem:[%s1198_s1 + $0x20] sm:$0xff]   ;;  %v909_v21 = vld [vmem:[%s1198_s1 + $0x28] sm:$0xff]  }
   0x7   :  { %791 = vmatpush3.bf16.msra.mxu0 %v893_v5  ;;  %v902_v14 = vld [vmem:[%s1198_s1 + $0xd8] sm:$0xff]   ;;  %v906_v18 = vld [vmem:[%s1198_s1 + $0xe0] sm:$0xff]   ;;  %v910_v22 = vld [vmem:[%s1198_s1 + $0xe8] sm:$0xff]  }
   0x8   :  { %792 = vmatprep.subr.bf16.mxu0 %v896_v8  ;;  %v903_v15 = vld [vmem:[%s1198_s1 + $0x98] sm:$0xff]   ;;  %v907_v19 = vld [vmem:[%s1198_s1 + $0xa0] sm:$0xff]   ;;  %v911_v23 = vld [vmem:[%s1198_s1 + $0xa8] sm:$0xff]  }
   0x9   :  { %813 = vmatpush3.bf16.msra.mxu1 %v895_v7  ;;  %v912_v24 = vld [vmem:[%s1198_s1 + $0x70] sm:$0xff]   ;;  %v916_v28 = vld [vmem:[%s1198_s1 + $0x78] sm:$0xff]   ;;  %v22_v31 = vld [vmem:[%s1197_s0] sm:$0xff] }
   0xa   :  { %814 = vmatprep.subr.bf16.mxu1 %v898_v10  ;;  %v913_v25 = vld [vmem:[%s1198_s1 + $0x30] sm:$0xff]   ;;  %v917_v29 = vld [vmem:[%s1198_s1 + $0x38] sm:$0xff]   ;;  %v729_v32 = vcombine.low %v22_v31, %v22_v31  ;;  %v730_v33 = vcombine.high %v22_v31, %v22_v31  ;;  %v922_v35 = vld [vmem:[%s1198_s1 + $0x140] sm:$0xff]  }
   0xb   :  { %793 = vmatpush3.bf16.msra.mxu0 %v897_v9  ;;  %v914_v26 = vld [vmem:[%s1198_s1 + $0xf0] sm:$0xff]   ;;  %v918_v30 = vld [vmem:[%s1198_s1 + $0xf8] sm:$0xff]   ;;  %v23_v36 = vld [vmem:[%s1197_s0 + $0x8] sm:$0xff] }
   0xc   :  { %794 = vmatprep.subr.bf16.mxu0 %v900_v12  ;;  %v915_v27 = vld [vmem:[%s1198_s1 + $0xb0] sm:$0xff]   ;;  %v921_v34 = vld [vmem:[%s1198_s1 + $0xb8] sm:$0xff]   ;;  %485 = vmatprep.mubr.bf16.mxu0 %v730_v33  ;;  %v731_v37 = vcombine.low %v23_v36, %v23_v36  ;;  %v732_v38 = vcombine.high %v23_v36, %v23_v36  ;;  %v925_v39 = vld [vmem:[%s1198_s1 + $0x100] sm:$0xff]  }
   0xd   :  { %815 = vmatpush3.bf16.msra.mxu1 %v899_v11  ;;  %v926_v40 = vld [vmem:[%s1198_s1 + $0x148] sm:$0xff]   ;;  %v928_v42 = vld [vmem:[%s1198_s1 + $0x150] sm:$0xff]   ;;  %v930_v45 = vld [vmem:[%s1198_s1 + $0x158] sm:$0xff]  }
   0xe   :  { %816 = vmatprep.subr.bf16.mxu1 %v902_v14  ;;  %525 = vmatprep.mubr.bf16.mxu1 %v732_v38  ;;  %v927_v41 = vld [vmem:[%s1198_s1 + $0x108] sm:$0xff]   ;;  %v929_v44 = vld [vmem:[%s1198_s1 + $0x110] sm:$0xff]   ;;  %v931_v46 = vld [vmem:[%s1198_s1 + $0x118] sm:$0xff]  }
   0xf   :  { %795 = vmatpush3.bf16.msra.mxu0 %v901_v13  ;;  %v932_v47 = vld [vmem:[%s1198_s1 + $0x160] sm:$0xff]   ;;  %v934_v49 = vld [vmem:[%s1198_s1 + $0x168] sm:$0xff]   ;;  %v24_v51 = vld [vmem:[%s1197_s0 + $0x10] sm:$0xff] }
  0x10   :  { %796 = vmatprep.subr.bf16.mxu0 %v904_v16  ;;  %v933_v48 = vld [vmem:[%s1198_s1 + $0x120] sm:$0xff]   ;;  %v734_v52 = vcombine.high %v24_v51, %v24_v51  ;;  %v943_v53 = vld [vmem:[%s1197_s0 + $0x18] ss:$0 sps:$4 sm:$0xff]  }
  0x11   :  { %817 = vmatpush3.bf16.msra.mxu1 %v903_v15  ;;  %v940_v50 = vld [vmem:[%s1198_s1 + $0x180] sm:$0xff]  }
  0x12   :  { %818 = vmatprep.subr.bf16.mxu1 %v906_v18 }
  0x13   :  { %797 = vmatpush3.bf16.msra.mxu0 %v905_v17 }
  0x14   :  { %798 = vmatprep.subr.bf16.mxu0 %v908_v20 }
  0x15   :  { %819 = vmatpush3.bf16.msra.mxu1 %v907_v19 }
  0x16   :  { %820 = vmatprep.subr.bf16.mxu1 %v910_v22 }
  0x17   :  { %799 = vmatpush3.bf16.msra.mxu0 %v909_v21 }
  0x18   :  { %800 = vmatprep.subr.bf16.mxu0 %v912_v24 }
  0x19   :  { %821 = vmatpush3.bf16.msra.mxu1 %v911_v23 }
  0x1a   :  { %822 = vmatprep.subr.bf16.mxu1 %v914_v26 }
  0x1b   :  { %801 = vmatpush3.bf16.msra.mxu0 %v913_v25 }
  0x1c   :  { %802 = vmatprep.subr.bf16.mxu0 %v916_v28 }
  0x1d   :  { %823 = vmatpush3.bf16.msra.mxu1 %v915_v27 }
  0x1e   :  { %824 = vmatprep.subr.bf16.mxu1 %v918_v30 }
  0x1f   :  { %803 = vmatpush3.bf16.msra.mxu0 %v917_v29 }
  0x20   :  { %832 = vmatprep.subr.bf16.mxu0 %v922_v35 }
  0x21   :  { %825 = vmatpush3.bf16.msra.mxu1 %v921_v34 }
  0x22   :  { %486 = vmatmul.mubr.bf16.vlgmr.msra.gmra.mrb[0].mxu0 %v729_v32  ;;  %861 = vmatprep.subr.bf16.mxu1 %v972_v43 }
  0x23   :  { %833 = vmatpush3.bf16.msra.mxu0 %v925_v39 }
  0x24   :  { %526 = vmatmul.mubr.bf16.vlgmr.msra.gmra.mrb[0].mxu1 %v731_v37  ;;  %834 = vmatprep.subr.bf16.mxu0 %v926_v40 }
  0x25   :  { %863 = vmatprep.mubr.msk.bf16.mxu1 %vm973_vm0, %v972_v43 }
  0x27   :  { %835 = vmatpush3.bf16.msra.mxu0 %v927_v41 }
  0x28   :  { %836 = vmatprep.subr.bf16.mxu0 %v928_v42 }
  0x2b   :  { %837 = vmatpush3.bf16.msra.mxu0 %v929_v44 }
  0x2c   :  { %838 = vmatprep.subr.bf16.mxu0 %v930_v45 }
  0x2f   :  { %839 = vmatpush3.bf16.msra.mxu0 %v931_v46 }
  0x30   :  { %840 = vmatprep.subr.bf16.mxu0 %v932_v47 }
  0x31   :  { %10 = vsyncpa [#allocation3], 0  ;;  %862 = vmatpush3.bf16.msra.mxu1 %v940_v50  ;;  %vm449_vm1 = vcmask 130048   ;;  %v935_v54 = vld [vmem:[%s1198_s1 + $0x128] sm:$0xff]   ;;  %565 = vmatprep.mubr.bf16.mxu0 %v734_v52  ;;  %v936_v55 = vld [vmem:[%s1198_s1 + $0x170] sm:$0xff]   ;;  %v733_v59 = vcombine.low %v24_v51, %v24_v51  ;;  %v974_v63 = vmov 0.0|0.0   ;;  %v699_v28 = vlaneseq }
  0x32   :  { %v937_v56 = vld [vmem:[%s1198_s1 + $0x130] sm:$0xff]   ;;  %v938_v57 = vld [vmem:[%s1198_s1 + $0x178] sm:$0xff]   ;;  %v614_v60 = vld [vmem:[%s1200_s3] sm:$0xff]  ;;  %878 = vmatprep.subr.bf16.mxu1 %v974_v63  ;;  %vm625_vm2 = vcmask 261120   ;;  %s975_s7 = smov [#allocation2]  }
  0x33   :  { %841 = vmatpush3.bf16.msra.mxu0 %v933_v48  ;;  %v939_v58 = vld [vmem:[%s1198_s1 + $0x138] sm:$0xff]   ;;  %v615_v61 = vld [vmem:[%s1200_s3 + $0x8] sm:$0xff]  ;;  %v616_v0 = vld [vmem:[%s1200_s3 + $0x10] sm:$0xff]  ;;  %v700_v29 = vand.u32 127, %v699_v28  ;;  %s720_s8 = sshll.u32 %s975_s7, 4  ;;  %s721_s8 = int_to_ptr.vmem [resolvable:$true] %s720_s8 }
  0x34   :  { %842 = vmatprep.subr.bf16.mxu0 %v934_v49  ;;  %864 = vmatmul.mubr.msk.bf16.vlgmr.msra.gmra.mrb[4].mxu1 %vm449_vm1, %v943_v53  ;;  %v879_v62 = vpack.c.bf16 %v615_v61, %v614_v60  ;;  %v617_v1 = vld [vmem:[%s1200_s3 + $0x18] sm:$0xff]  ;;  %v728_v4 = vld [vmem:[%s1199_s2] ss:$0 sm:$0xff]  ;;  %p953_p1 = scmp.lt.s32.totalorder %s721_s8, %s721_s8 }
  0x35   :  { %875 = vmatprep.mubr.msk.f32.mxu1 %vm973_vm0, %v972_v43  ;;  %v882_v2 = vpack.c.bf16 %v617_v1, %v616_v0  ;;  %v786_v30 = vld [vmem:[%s1201_s4] ss:$0 sm:$0xff]  ;;  %vm701_vm3 = vcmp.lt.s32.totalorder %v700_v29, 10  ;;  %s948_s4 = scalar_lea.vmem %s721_s8, 128 }
  0x36   :  { %880 = vmatpush3.bf16.msra.mxu1 %v879_v62  ;;  %p949_p0 = scmp.ne.s32.totalorder %s721_s8, %s948_s4  ;;  %p954_p2 = scmp.lt.s32.totalorder %s948_s4, %s948_s4 }
  0x37   :  { %843 = vmatpush3.bf16.msra.mxu0 %v935_v54  ;;  %881 = vmatprep.subr.bf16.mxu1 %v974_v63 }
  0x38   :  { %844 = vmatprep.subr.bf16.mxu0 %v936_v55  ;;  %p955_p3 = por %p954_p2, %p953_p1 }
  0x3a   :  { %883 = vmatpush3.bf16.msra.mxu1 %v882_v2  ;;  %p956_p4 = pnand %p955_p3, %p949_p0 }
  0x3b   :  { %845 = vmatpush3.bf16.msra.mxu0 %v937_v56 }
  0x3c   :  { %846 = vmatprep.subr.bf16.mxu0 %v938_v57 }
  0x3f   :  { %847 = vmatpush3.bf16.msra.mxu0 %v939_v58 }
  0x42   :  { %566 = vmatmul.mubr.bf16.vlgmr.msra.gmra.mrb[4].mxu0 %v733_v59 }
  0xf5   :  { %v804_v3 = vpop.f32.mrb[0].mxu0 }
  0xf6   :  { %v805_v5 = vpop.f32.mrb[1].mxu0 }
  0xf7   :  { %v806_v6 = vadd.f32 %v805_v5, %v804_v3  ;;  %v807_v7 = vpop.f32.mrb[2].mxu0  ;;  %v826_v8 = vpop.f32.mrb[0].mxu1 }
  0xf8   :  { %v808_v9 = vpop.f32.mrb[3].mxu0  ;;  %v827_v10 = vpop.f32.mrb[1].mxu1 }
  0xf9   :  { %v488_v11 = vadd.f32 %v806_v6, %v728_v4  ;;  %v828_v12 = vadd.f32 %v827_v10, %v826_v8  ;;  %v829_v13 = vpop.f32.mrb[2].mxu1 }
  0xfa   :  { %v830_v14 = vpop.f32.mrb[3].mxu1 }
  0xfb   :  { %v528_v15 = vadd.f32 %v828_v12, %v488_v11 }
 0x107   :  { %v607_v16 = vpop.f32.mrb[4].mxu1 }
 0x108   :  { %v865_v17 = vpop.f32.mrb[5].mxu1 }
 0x109   :  { %v610_v18 = vpop.f32.mrb[6].mxu1 }
 0x10a   :  { %v866_v19 = vpop.f32.mrb[7].mxu1 }
 0x115   :  { %v848_v20 = vpop.f32.mrb[4].mxu0 }
 0x116   :  { %v849_v21 = vpop.f32.mrb[5].mxu0 }
 0x117   :  { %v850_v22 = vadd.f32 %v849_v21, %v848_v20  ;;  %v851_v23 = vpop.f32.mrb[6].mxu0 }
 0x118   :  { %v852_v24 = vpop.f32.mrb[7].mxu0 }
 0x119   :  { %v568_v25 = vadd.f32 %v850_v22, %v528_v15 }
 0x11b   :  { %v608_v26 = vadd.f32 %v607_v16, %v568_v25 }
 0x11d   :  { %v613_v27 = vmax.f32 %v608_v26, 0.0 }
 0x11f   :  { %876 = vmatmul.mubr.msk.f32.vlgmr.msra.gmra.mrb[8].mxu1 %vm625_vm2, %v613_v27 }
 0x1f2   :  { %v695_v31 = vpop.f32.mrb[8].mxu1 }
 0x1f3   :  { %v696_v32 = vadd.f32 %v786_v30, %v695_v31  ;;  %v877_v33 = vpop.f32.mrb[9].mxu1 }
 0x1f5   :  { %v702_v34 = vsel %vm701_vm3, %v696_v32, -1e+30 }
 0x1f6   :  { %703 = vmax.xlane.f32.xlu0 %v702_v34 }
 0x283   :  { %v704_v35 = vpop.xlane.xlu0 %703 }
 0x284   :  { %v705_v36 = vsub.f32 %v702_v34, %v704_v35 }
 0x286   :  { %v706_v37 = vmul.f32 1.442695, %v705_v36 }
 0x288   :  { %944 = vpow2.f32 %v706_v37 }
 0x292   :  { %v945_v38 = vpop.eup %944 }
 0x293   :  { %708 = vadd.xlane.f32.xlu0 %v945_v38 }
 0x320   :  { %v709_v39 = vpop.xlane.xlu0 %708 }
 0x321   :  { %946 = vlog2.f32 %v709_v39 }
 0x32b   :  { %v947_v40 = vpop.eup %946 }
 0x32c   :  { %v711_v41 = vmul.f32 0.6931472, %v947_v40 }
 0x32e   :  { %v712_v42 = vsub.f32 %v705_v36, %v711_v41 }
 0x330   :  { %713 = vst [vmem:[#allocation2] sm:$0xff] %v712_v42 }
 0x331   :  { %959 = shalt.err (!%p956_p4)
}
 0x332   :  { %s960_s11 = scalar_lea.hbm %s1202_s5, 128 }
 0x333   :  { %p961_p5 = scmp.ne.s32.totalorder %s1202_s5, %s960_s11  ;;  %p964_p6 = scmp.lt.u32.totalorder %s960_s11, %s1202_s5 }
 0x335   :  { %p966_p7 = pnand %p964_p6, %p961_p5 }
 0x337   :  { %969 = shalt.err (!%p966_p7)
}
 0x338   :  { %723 = dma.vmem_to_hbm [thread:$0]  %s721_s8, 128, %s1202_s5, [#allocation3]  }
 0x339   :  { %970 = dma.done.wait [#allocation3], 128  }
 0x33a   :  { %971 = vsyncadd [#allocation3], 4294967168 }
 0x33b   :  { %727 = vsyncpa [#allocation3], 1 }

</bundles_post_ra>
